<compile_context>
chip_gen: v7x
topology: tpu7x:2x2x1
jax: 0.10.0
libtpu: 0.0.40
codegen_flags: <defaults>
</compile_context>

<pallas_src>
import math

import jax
import jax.numpy as jnp
from jax.experimental import pallas as pl
from jax.experimental.pallas import tpu as pltpu


def _vmem_capacity_bytes():
    """Physical VMEM per TensorCore; conservative fallback if the query is unavailable."""
    try:
        return int(pltpu.get_tpu_info().vmem_capacity_bytes)
    except Exception:
        return 64 << 20  # v7x per-TC VMEM (smallest of v5e/v6e/v7x)


def _pick_tile_m(M, d_model, dtype, *, n_io_streams, extra_f32_tiles,
                 min_grid=4, max_tile=512):
    """Pick the token-tile height from the VMEM budget.

    n_io_streams:    dtype-width tiles double-buffered by the pipeline (inputs + outputs).
    extra_f32_tiles: approx. tile-sized f32 temporaries created by the in-kernel upcast.
    """
    itemsize = jnp.dtype(dtype).itemsize
    row_mult = 8 * max(1, 4 // itemsize)          # sublane packing: 8 (f32) / 16 (bf16) / 32 (i8)

    budget = int(_vmem_capacity_bytes() * 0.5)    # leave headroom vs physical VMEM
    per_row = d_model * (n_io_streams * 2 * itemsize + extra_f32_tiles * 4)
    tm = max(row_mult, (budget // max(per_row, 1)) // row_mult * row_mult)
    tm = min(tm, max_tile)                        # ~85% of HBM roofline reached by ~512 rows

    # Keep >= min_grid steps so both v7x TensorCores get work (and pipelining depth).
    per_step = -(-M // min_grid)                  # ceil(M / min_grid)
    per_step = -(-per_step // row_mult) * row_mult
    tm = min(tm, max(row_mult, per_step))

    # Never larger than the (sublane-padded) problem itself.
    padded_M = -(-M // row_mult) * row_mult
    return min(tm, padded_M)


def _make_layernorm_kernel(eps, d_model):
    def _layernorm_kernel(x_ref, a2_ref, b2_ref, o_ref):
        # x_ref: (TM, D) token tile; a2/b2: (1, D). f32 math internally.
        x = x_ref[...].astype(jnp.float32)
        mean = jnp.mean(x, axis=-1, keepdims=True)
        xc = x - mean
        # torch.Tensor.std is the unbiased estimator (divides by N-1).
        var = jnp.sum(xc * xc, axis=-1, keepdims=True) * (1.0 / (d_model - 1))
        std = jnp.sqrt(var)
        # Hoisted per-row reciprocal (TM divides instead of TM*d_model); exact for accuracy.
        inv = 1.0 / (std + eps)
        y = a2_ref[...].astype(jnp.float32) * (xc * inv) + b2_ref[...].astype(jnp.float32)
        o_ref[...] = y.astype(o_ref.dtype)
    return _layernorm_kernel


def layer_norm(x, a2, b2, *, eps=1e-6, tile_m=None):
    """x: [batch, seq, d_model]; a2/b2: [d_model]."""
    batch, seq, d_model = x.shape
    assert d_model > 1, "unbiased std needs d_model > 1"
    M = batch * seq
    itemsize = jnp.dtype(x.dtype).itemsize

    # 2 dtype-width streams (x in, out) double-buffered + ~3 f32 tile temporaries.
    tm = tile_m or _pick_tile_m(M, d_model, x.dtype, n_io_streams=2, extra_f32_tiles=3)
    grid_m = pl.cdiv(M, tm)  # ragged last block is fine: per-row reduction, masked store

    x2d = x.reshape(M, d_model)
    a2_2d = a2.reshape(1, d_model)
    b2_2d = b2.reshape(1, d_model)

    # Explicit scoped-VMEM limit sized to the actual residency (default scoped limit
    # is only 16 MiB on v5e / 32 MiB on v6e & v7x).
    vmem_needed = (2 * 2 * tm * d_model * itemsize      # double-buffered x + out tiles
                   + 3 * tm * d_model * 4               # f32 temporaries from the upcast
                   + 2 * 2 * d_model * itemsize)        # a_2 / b_2 blocks
    vmem_limit = int(min(0.9 * _vmem_capacity_bytes(), max(32 << 20, 2 * vmem_needed)))

    # Bandwidth-bound streaming op: one read + one write of x, params read once.
    io_bytes = 2 * M * d_model * itemsize + 2 * d_model * jnp.dtype(a2.dtype).itemsize
    cost = pl.CostEstimate(flops=7 * M * d_model,
                           transcendentals=2 * M,       # sqrt + one reciprocal per row
                           bytes_accessed=io_bytes)

    # NOTE: d_model < 128 leaves the output lane dimension partially masked; repacking
    # rows to a lane-dense slab is not done here since the per-row reduction spans d_model.
    out2d = pl.pallas_call(
        _make_layernorm_kernel(eps, d_model),
        out_shape=jax.ShapeDtypeStruct((M, d_model), x.dtype),
        grid_spec=pltpu.PrefetchScalarGridSpec(
            num_scalar_prefetch=0,
            grid=(grid_m,),
            in_specs=[
                pl.BlockSpec((tm, d_model), lambda i: (i, 0)),   # x tile (lane-dense)
                pl.BlockSpec((1, d_model), lambda i: (0, 0)),    # a_2 (gain)
                pl.BlockSpec((1, d_model), lambda i: (0, 0)),    # b_2 (bias)
            ],
            out_specs=pl.BlockSpec((tm, d_model), lambda i: (i, 0)),
        ),
        compiler_params=pltpu.CompilerParams(
            dimension_semantics=("parallel",),
            vmem_limit_bytes=vmem_limit),
        cost_estimate=cost,
    )(x2d, a2_2d, b2_2d)
    return out2d.reshape(batch, seq, d_model)


def residual_connection_norm(x, sublayer, a2, b2, *, eps=1e-6, tile_m=None):
    """forward(x, sublayer) = x + dropout(sublayer(norm(x)))   (dropout = eval identity)."""
    xn = layer_norm(x, a2, b2, eps=eps, tile_m=tile_m)
    sub_out = sublayer(xn)
    # Residual add stays in plain JAX so XLA fuses it into the sublayer's epilogue —
    # a Pallas call here would force an extra HBM round-trip of the activation.
    return x + sub_out


def _reference(x, sublayer, a2, b2, eps=1e-6):
    mean = jnp.mean(x, axis=-1, keepdims=True)
    std = jnp.std(x, axis=-1, keepdims=True, ddof=1)     # torch unbiased std
    xn = a2 * (x - mean) / (std + eps) + b2
    return x + sublayer(xn)                              # eval-mode dropout = identity


if __name__ == "__main__":
    batch, seq, d_model = 2, 8, 32

    key = jax.random.PRNGKey(0)
    kx, ka, kb, kw, kbias = jax.random.split(key, 5)

    x = jax.random.normal(kx, (batch, seq, d_model), dtype=jnp.float32)

    # LayerNorm parameters (perturbed from ones/zeros so the check is non-trivial).
    a2 = 1.0 + 0.1 * jax.random.normal(ka, (d_model,), dtype=jnp.float32)
    b2 = 0.1 * jax.random.normal(kb, (d_model,), dtype=jnp.float32)

    # Representative same-size sublayer: a linear projection (any JAX callable works).
    bound = 1.0 / math.sqrt(d_model)
    w = jax.random.uniform(kw, (d_model, d_model), jnp.float32, -bound, bound)
    bias = jax.random.uniform(kbias, (d_model,), jnp.float32, -bound, bound)
    sublayer = lambda h: jnp.einsum("bsd,de->bse", h, w) + bias

    fwd = jax.jit(lambda xx: residual_connection_norm(xx, sublayer, a2, b2))
    out = jax.block_until_ready(fwd(x))

    ref = _reference(x, sublayer, a2, b2)
    assert out.shape == (batch, seq, d_model)
    assert jnp.allclose(out, ref, atol=1e-5, rtol=1e-5), "mismatch vs reference"

    print("KERNEL_OK")
</pallas_src>

<mosaic_0001>
module attributes {stable_mosaic.version = 11 : i64} {
  func.func @_layernorm_kernel(%arg0: i32, %arg1: memref<8x32xf32, #tpu.memory_space<vmem>>, %arg2: memref<1x32xf32, #tpu.memory_space<vmem>>, %arg3: memref<1x32xf32, #tpu.memory_space<vmem>>, %arg4: memref<8x32xf32, #tpu.memory_space<vmem>>) attributes {dimension_semantics = [#tpu.dimension_semantics<parallel>], iteration_bounds = array<i64: 2>, scalar_prefetch = 0 : i64, scratch_operands = 0 : i64, tpu.core_type = #tpu.core_type<tc>, window_params = [{transform_indices = @transform_0, window_bounds = array<i64: 8, 32>}, {pipeline_mode = #tpu.pipeline_mode<synchronous>, transform_indices = @transform_1, window_bounds = array<i64: 1, 32>}, {pipeline_mode = #tpu.pipeline_mode<synchronous>, transform_indices = @transform_2, window_bounds = array<i64: 1, 32>}, {transform_indices = @transform_3, window_bounds = array<i64: 8, 32>}]} {
    %c0 = arith.constant 0 : index
    %c0_0 = arith.constant 0 : index
    %0 = vector.load %arg1[%c0, %c0_0] : memref<8x32xf32, #tpu.memory_space<vmem>>, vector<8x32xf32>
    %cst = arith.constant dense<0.000000e+00> : vector<8xf32>
    %1 = vector.multi_reduction <add>, %0, %cst [1] : vector<8x32xf32> to vector<8xf32>
    %2 = vector.shape_cast %1 : vector<8xf32> to vector<8x1xf32>
    %cst_1 = arith.constant 3.200000e+01 : f32
    %3 = vector.broadcast %cst_1 : f32 to vector<8x1xf32>
    %4 = arith.divf %2, %3 : vector<8x1xf32>
    %5 = vector.broadcast %4 : vector<8x1xf32> to vector<8x32xf32>
    %6 = arith.subf %0, %5 : vector<8x32xf32>
    %7 = arith.mulf %6, %6 : vector<8x32xf32>
    %cst_2 = arith.constant dense<0.000000e+00> : vector<8xf32>
    %8 = vector.multi_reduction <add>, %7, %cst_2 [1] : vector<8x32xf32> to vector<8xf32>
    %9 = vector.shape_cast %8 : vector<8xf32> to vector<8x1xf32>
    %cst_3 = arith.constant 0.0322580636 : f32
    %10 = vector.broadcast %cst_3 : f32 to vector<8x1xf32>
    %11 = arith.mulf %9, %10 : vector<8x1xf32>
    %12 = math.sqrt %11 : vector<8x1xf32>
    %cst_4 = arith.constant 9.99999997E-7 : f32
    %13 = vector.broadcast %cst_4 : f32 to vector<8x1xf32>
    %14 = arith.addf %12, %13 : vector<8x1xf32>
    %cst_5 = arith.constant 1.000000e+00 : f32
    %15 = vector.broadcast %cst_5 : f32 to vector<8x1xf32>
    %16 = arith.divf %15, %14 : vector<8x1xf32>
    %c0_6 = arith.constant 0 : index
    %c0_7 = arith.constant 0 : index
    %17 = vector.load %arg2[%c0_6, %c0_7] : memref<1x32xf32, #tpu.memory_space<vmem>>, vector<1x32xf32>
    %18 = vector.broadcast %16 : vector<8x1xf32> to vector<8x32xf32>
    %19 = arith.mulf %6, %18 : vector<8x32xf32>
    %20 = vector.broadcast %17 : vector<1x32xf32> to vector<8x32xf32>
    %21 = arith.mulf %20, %19 : vector<8x32xf32>
    %c0_8 = arith.constant 0 : index
    %c0_9 = arith.constant 0 : index
    %22 = vector.load %arg3[%c0_8, %c0_9] : memref<1x32xf32, #tpu.memory_space<vmem>>, vector<1x32xf32>
    %23 = vector.broadcast %22 : vector<1x32xf32> to vector<8x32xf32>
    %24 = arith.addf %21, %23 : vector<8x32xf32>
    %c0_10 = arith.constant 0 : index
    %c0_11 = arith.constant 0 : index
    %25 = vector.load %arg4[%c0_10, %c0_11] : memref<8x32xf32, #tpu.memory_space<vmem>>, vector<8x32xf32>
    tpu.vector_store %arg4[%c0_10, %c0_11], %24 {strides = array<i32>} : memref<8x32xf32, #tpu.memory_space<vmem>>, vector<8x32xf32>,
    return
  }
  func.func @transform_0(%arg0: i32) -> (i32, i32) {
    %c0_i32 = arith.constant 0 : i32
    %c0_i32_0 = arith.constant 0 : i32
    return %arg0, %c0_i32 : i32, i32
  }
  func.func @transform_1(%arg0: i32) -> (i32, i32) {
    %c0_i32 = arith.constant 0 : i32
    %c0_i32_0 = arith.constant 0 : i32
    %c0_i32_1 = arith.constant 0 : i32
    return %c0_i32, %c0_i32_0 : i32, i32
  }
  func.func @transform_2(%arg0: i32) -> (i32, i32) {
    %c0_i32 = arith.constant 0 : i32
    %c0_i32_0 = arith.constant 0 : i32
    %c0_i32_1 = arith.constant 0 : i32
    return %c0_i32, %c0_i32_0 : i32, i32
  }
  func.func @transform_3(%arg0: i32) -> (i32, i32) {
    %c0_i32 = arith.constant 0 : i32
    %c0_i32_0 = arith.constant 0 : i32
    return %arg0, %c0_i32 : i32, i32
  }
}

</mosaic_0001>

<bundles_post_ra>
// kernel: _lambda_.1
= control target key start
LH: loop header
LB: loop body
LE: loop exit
PB: predicated region body
PF: predicated region fallthrough
CT: control target
= control target key end

     0   :  { %8 = vsyncpa [#allocation3], 0  ;;  %s550_s0 = inlined_call_operand.hbm [shape: f32[16,32], index: 0, kind: input, shape index: {}]   ;;  %s551_s1 = inlined_call_operand.vmem [shape: f32[1,32], index: 1, kind: input, shape index: {}]   ;;  %s552_s2 = inlined_call_operand.vmem [shape: f32[1,32], index: 2, kind: input, shape index: {}]   ;;  %s553_s3 = inlined_call_operand.vmem [shape: f32[16,32], index: 3, kind: output, shape index: {}]  }
   0x1   :  { %10 = vsyncpa [#allocation3 + $0x1], 0  ;;  %s434_s12 = smov 0   ;;  %s436_s13 = smov 0  }
   0x2   :  { %s438_s14 = smov 0   ;;  %s440_s15 = smov 0  }
   0x3 LB: > { %s453_s16 = sadd.s32 4294967295, %s411_s15   ;;  %s456_s17 = sadd.s32 1, %s411_s15   ;;  %s411_s15 = sphi %s440_s15, %s561_s15   ;;  %s407_s14 = sphi %s438_s14, %s560_s14   ;;  %s403_s13 = sphi %s436_s13, %s559_s13   ;;  %s399_s12 = sphi %s434_s12, %s558_s12  }
   0x4   : > { %s20_s18 = ssub.s32 %s411_s15, %s456_s17  ;;  %s23_s19 = sadd.s32 1, %s407_s14 }
   0x5   : > { %p21_p0 = scmp.eq.s32.totalorder %s20_s18, 0  ;;  %p30_p1 = scmp.ne.s32.totalorder %s407_s14, %s403_s13 }
   0x6   : > { %p31_p2 = scmp.eq.s32.totalorder %s411_s15, 0  ;;  %p36_p3 = scmp.ne.s32.totalorder %s403_s13, %s399_s12 }
   0x7   : > { %s466_s20 = scalar_select %p21_p0, %s407_s14, %s23_s19  }
   0x8   : > { %p32_p4 = por %p31_p2, %p30_p1  ;;  %p37_p5 = scmp.eq.s32.totalorder %s453_s16, 0 }
   0x9   : > { %p310_p6 = scmp.lt.s32.totalorder %s411_s15, 2  ;;  %s134_s22 = sand.u32 1, %s407_s14  }
   0xa   : > { %p470_p7 = por %p37_p5, %p36_p3  ;;  %s295_s23 = sshll.u32 %s134_s22, 3 }
   0xb   : > { %s296_s24 = sshll.u32 %s411_s15, 7  ;;  %s138_s28 = scalar_lea.vmem [#allocation2], %s295_s23 }
   0xc   : > { %s479_s27 = scalar_lea.hbm %s550_s0, %s296_s24  ;;  %s145_s29 = sshll.u32 %s138_s28, 4  ;;  %s481_s29 = int_to_ptr.vmem [resolvable:$true] %s145_s29 }
   0xd   : > { %p483_p8 = pnand %p310_p6, %p32_p4  ;;  %s135_s4 = scalar_lea.sflag [#allocation3], %s134_s22 }
   0xe   : > { %s347_s5 = scalar_lea.hbm %s479_s27, 128  ;;  %s352_s8 = scalar_lea.hbm %s550_s0, 256 }
   0xf   : > { %p348_p11 = scmp.ne.s32.totalorder %s479_s27, %s347_s5  ;;  %p349_p12 = pneg %p483_p8 }
  0x10   : > { %p353_p1 = scmp.lt.u32.totalorder %s479_s27, %s550_s0  ;;  %p354_p2 = scmp.lt.u32.totalorder %s352_s8, %s347_s5 }
  0x11   : > { %p350_p13 = pnand %p349_p12, %p348_p11  ;;  %p356_p4 = scmp.lt.u32.totalorder %s347_s5, %s479_s27 }
  0x12   : > { %p355_p3 = por %p354_p2, %p353_p1 }
  0x13   : > { %p351_p0 = pneg %p350_p13 }
  0x14   : > { %p357_p5 = por %p356_p4, %p355_p3 }
  0x16   : > { %p358_p6 = pnand %p357_p5, %p351_p0 }
  0x18   : > { %361 = shalt.err (!%p358_p6)
}
  0x19   : > { %s362_s11 = scalar_lea.vmem %s481_s29, 128  ;;  %s413_s12 = smov [#allocation2]  }
  0x1a   : > { %p363_p11 = scmp.ne.s32.totalorder %s481_s29, %s362_s11  ;;  %s367_s18 = sshll.u32 %s413_s12, 4  ;;  %s368_s18 = int_to_ptr.vmem [resolvable:$false] %s367_s18 }
  0x1b   : > { %s369_s19 = scalar_lea.vmem %s368_s18, 256  ;;  %p370_p10 = scmp.lt.s32.totalorder %s481_s29, %s368_s18 }
  0x1c   : > { %p365_p13 = pnand %p363_p11, %p349_p12  ;;  %p371_p1 = scmp.lt.s32.totalorder %s369_s19, %s362_s11 }
  0x1e   : > { %p366_p9 = pneg %p365_p13  ;;  %p372_p2 = por %p371_p1, %p370_p10 }
  0x20   : > { %p373_p3 = pnand %p372_p2, %p366_p9 }
  0x22   : > { %376 = shalt.err (!%p373_p3)
}
  0x23   : > { %309 = dma.hbm_to_vmem [thread:$0]  (!%p483_p8), %s479_s27, 128, %s481_s29, %s135_s4  }
  0x24   : > { %p556_p0 = scmp.lt.s32.totalorder %s411_s15, 3  ;;  %p557_p4 = scmp.ge.s32.totalorder %s411_s15, 1 }
  0x26   : > { %p151_p12 = pnand %p557_p4, %p556_p0 }
  0x27   : > { %s156_s22 = sand.u32 (!%p151_p12), 1, %s403_s13  }
  0x28   : > { %154 = sbr.rel (%p151_p12) target bundleno = 378 (0x17a), region = 32  ;;  %s298_s23 = sshll.u32 (!%p151_p12), %s156_s22, 3 }
  0x29   : > { %s157_s24 = scalar_lea.sflag (!%p151_p12), [#allocation3], %s156_s22  ;;  %s160_s25 = scalar_lea.vmem (!%p151_p12), [#allocation2], %s298_s23 }
  0x2f   : > { %394 = dma.done.wait (%p470_p7), %s157_s24, 128  }
  0x30   : > { %396 = vsyncadd (%p470_p7), %s157_s24, 4294967168  ;;  %vm187_vm0 = vcmask 261120   ;;  %v186_v0 = vld [vmem:[%s160_s25] sm:$0xff]  ;;  %p182_p7 = scmp.lt.s32.totalorder %s453_s16, 1 }
  0x31   : > { %v188_v1 = vsel %vm187_vm0, %v186_v0, 0.0  ;;  %v300_v16 = vld [vmem:[%s551_s1] ss:$0 sm:$0xff] }
  0x32   : > { %189 = vadd.xlane.f32.xlu0 %v188_v1  ;;  %s563_s16 = smov (!%p182_p7, %s453_s16), 1  ;;  %v301_v18 = vld [vmem:[%s552_s2] ss:$0 sm:$0xff] }
  0x33   : > { %s299_s26 = sshll.u32 %s563_s16, 3 }
  0x34   : > { %s185_s4 = scalar_lea.vmem %s553_s3, %s299_s26 }
  0xbf   : > { %v190_v2 = vpop.xlane.xlu0 %189 }
  0xc0   : > { %v192_v3 = vmul.f32 0.03125, %v190_v2 }
  0xc2   : > { %v193_v4 = vsub.f32 %v186_v0, %v192_v3 }
  0xc4   : > { %v194_v5 = vmul.f32 %v193_v4, %v193_v4 }
  0xc6   : > { %v195_v6 = vsel %vm187_vm0, %v194_v5, 0.0 }
  0xc7   : > { %196 = vadd.xlane.f32.xlu0 %v195_v6 }
 0x154   : > { %v197_v7 = vpop.xlane.xlu0 %196 }
 0x155   : > { %v198_v8 = vmul.f32 0.032258064, %v197_v7 }
 0x157   : > { %343 = vrsqrt.f32 %v198_v8  ;;  %vm201_vm1 = vcmp.eq.f32.partialorder %v198_v8, inf  ;;  %v204_v11 = vand.u32 2147483648, %v198_v8  ;;  %vm203_vm2 = vcmp.eq.f32.partialorder %v198_v8, 0.0 }
 0x161   : > { %v344_v9 = vpop.eup %343 }
 0x162   : > { %v200_v10 = vmul.f32 %v344_v9, %v198_v8 }
 0x164   : > { %v202_v12 = vsel %vm201_vm1, %v198_v8, %v200_v10 }
 0x165   : > { %v205_v13 = vsel %vm203_vm2, %v204_v11, %v202_v12 }
 0x166   : > { %v206_v14 = vadd.f32 1e-06, %v205_v13 }
 0x168   : > { %345 = vrcp.f32 %v206_v14 }
 0x172   : > { %v346_v15 = vpop.eup %345 }
 0x173   : > { %v210_v17 = vmul.f32 %v346_v15, %v193_v4 }
 0x175   : > { %v217_v19 = vmul.f32 %v300_v16, %v210_v17 }
 0x177   : > { %v225_v20 = vadd.f32 %v301_v18, %v217_v19 }
 0x179   : > { %226 = vst.msk [vmem:[%s185_s4] sm:$0xff] %vm187_vm0, %v225_v20 }
 0x17a PF: > { %p13_p8 = scmp.ge.s32.totalorder %s456_s17, 4   ;;  %s558_s12 = smov %s403_s13 }
 0x17b   : > { %s559_s13 = smov %s407_s14  ;;  %s560_s14 = smov %s466_s20 }
 0x17c   : > { %s561_s15 = smov %s456_s17  ;;  %15 = sbr.rel (!%p13_p8) target bundleno = 3 (0x3), region = 72 }
 0x183   :  { %246 = vsyncpa [#allocation3], 1 }
 0x184   :  { %248 = vsyncpa [#allocation3 + $0x1], 1 }

</bundles_post_ra>
